<compile_context>
chip_gen: v7x
topology: tpu7x:2x2x1
jax: 0.10.0
libtpu: 0.0.40
codegen_flags: <defaults>
</compile_context>

<pallas_src>
import functools

import jax
import jax.numpy as jnp
from jax.experimental import pallas as pl
from jax.experimental.pallas import tpu as pltpu


BN_EPS = 1e-5


def _round_up(v, m):
    return (v + m - 1) // m * m


def _stats_kernel(head_ref, x_ref, w1_ref, s1_ref, s2_ref):
    """Pass 1: accumulate global BN sums s1 = sum(h), s2 = sum(h*h) over the batch."""
    del head_ref  # head selection happens in the BlockSpec index_maps
    # Linear-1 on the MXU (bf16 operands, f32 accumulation).  The Linear-1 bias is
    # intentionally omitted: a per-feature bias added right before BatchNorm is cancelled
    # exactly by the mean subtraction (beta carries any shift); this also makes the
    # zero-padded batch rows contribute exactly 0 to both sums, so no row masking.
    h = jnp.dot(x_ref[...].astype(jnp.bfloat16), w1_ref[...],
                preferred_element_type=jnp.float32)

    @pl.when(pl.program_id(0) == 0)
    def _init():
        s1_ref[...] = jnp.zeros_like(s1_ref)
        s2_ref[...] = jnp.zeros_like(s2_ref)

    # Fused single-pass reduction (f32 accumulators).
    s1_ref[...] += jnp.sum(h, axis=0, keepdims=True)
    s2_ref[...] += jnp.sum(h * h, axis=0, keepdims=True)


def _apply_kernel(head_ref, x_ref, w1_ref, scale_ref, shift_ref, w2_ref, b2_ref, o_ref):
    """Pass 2: recompute h, apply the pre-folded BN scale/shift, relu, Linear-2."""
    del head_ref
    h = jnp.dot(x_ref[...].astype(jnp.bfloat16), w1_ref[...],
                preferred_element_type=jnp.float32)
    r = jnp.maximum(h * scale_ref[...] + shift_ref[...], 0.0)
    y = jnp.dot(r.astype(jnp.bfloat16), w2_ref[...],
                preferred_element_type=jnp.float32) + b2_ref[...]
    # TODO(synk): nn.Dropout(p=0.1) in training mode needs RNG
    # (pltpu.prng_seed + prng_random_bits); identity == eval-mode dropout here.
    o_ref[...] = y.astype(o_ref.dtype)


@functools.partial(jax.jit, static_argnames=("out_dtype",))
def mutil_projection_heads_forward(x, params, head_index, out_dtype=jnp.float32):
    """x: [N, input_dims] float32. params: stacked per-head arrays. head_index: runtime int."""
    n, d_in = x.shape
    num_heads, _, hidden = params["w1"].shape
    d_out = params["w2"].shape[2]

    # --- batch tiling: large tiles (step-overhead bound) balanced via cdiv to minimize
    # tail padding ---
    tile_cap = 2048
    n_tiles = pl.cdiv(n, tile_cap)
    tile_n = _round_up(pl.cdiv(n, n_tiles), 8)
    n_pad = tile_n * n_tiles
    d_out_pad = _round_up(d_out, 128)          # lane-dense output stores

    # x stays f32 (cast to bf16 inside the kernels) -- no wrapper pad+cast HBM round trip
    # in the common (divisible) case.  Zero-padded rows contribute exactly 0 to the sums.
    x_p = x if n_pad == n else jnp.pad(x, ((0, n_pad - n), (0, 0)))

    w1 = params["w1"].astype(jnp.bfloat16)
    w2 = params["w2"].astype(jnp.bfloat16)
    b2 = params["b2"]
    if d_out_pad != d_out:
        w2 = jnp.pad(w2, ((0, 0), (0, 0), (0, d_out_pad - d_out)))
        b2 = jnp.pad(b2, ((0, 0), (0, 0), (0, d_out_pad - d_out)))

    # Head index -> SMEM scalar-prefetch operand (clipped; the torch module asserts range).
    head = jnp.clip(jnp.asarray(head_index, jnp.int32), 0, num_heads - 1).reshape((1,))

    # Parameter blocks: leading (head) dim squeezed, block index from the prefetched scalar.
    def head_block(shape_tail):
        return pl.BlockSpec((None,) + shape_tail,
                            lambda i, hd: (hd[0],) + (0,) * len(shape_tail))

    # --- VMEM budget from the actual footprint (rec: keep headroom explicit on v7x) ---
    out_bytes = jnp.dtype(out_dtype).itemsize
    resident = (d_in * hidden * 2 + hidden * d_out_pad * 2      # W1, W2 (bf16)
                + 4 * hidden * 4 + d_out_pad * 4)               # scale/shift/sums, b2
    per_step = (2 * tile_n * d_in * 4                           # double-buffered x blocks
                + 2 * tile_n * d_out_pad * out_bytes            # double-buffered out blocks
                + 3 * tile_n * hidden * 4)                      # h / r / cast temporaries
    vmem_budget = int(min(max(2 * (resident + per_step), 16 << 20), 64 << 20))

    # ---------------- call 1: global BN statistics ----------------
    stats_grid = pltpu.PrefetchScalarGridSpec(
        num_scalar_prefetch=1,
        grid=(n_tiles,),
        in_specs=[
            pl.BlockSpec((tile_n, d_in), lambda i, hd: (i, 0)),   # x tile
            head_block((d_in, hidden)),                           # W1 (resident)
        ],
        out_specs=[
            pl.BlockSpec((1, hidden), lambda i, hd: (0, 0)),      # s1 (accumulator)
            pl.BlockSpec((1, hidden), lambda i, hd: (0, 0)),      # s2 (accumulator)
        ],
    )
    s1, s2 = pl.pallas_call(
        _stats_kernel,
        out_shape=(jax.ShapeDtypeStruct((1, hidden), jnp.float32),
                   jax.ShapeDtypeStruct((1, hidden), jnp.float32)),
        grid_spec=stats_grid,
        compiler_params=pltpu.CompilerParams(
            # s1/s2 accumulate across batch tiles -> serial axis.
            dimension_semantics=("arbitrary",),
            vmem_limit_bytes=vmem_budget,
        ),
        cost_estimate=pl.CostEstimate(
            flops=2 * n_pad * d_in * hidden,
            transcendentals=0,
            bytes_accessed=n_pad * d_in * 4 + d_in * hidden * 2 + 2 * hidden * 4,
        ),
    )(head, x_p, w1)

    # ---------------- BN fold (once, on (1, hidden) arrays) ----------------
    gamma = params["gamma"][head[0]]           # (1, hidden)
    beta = params["beta"][head[0]]
    inv_n = 1.0 / n
    mean = s1 * inv_n
    # NOTE: one-pass variance E[h^2] - E[h]^2 with f32 accumulators; clamped at 0.  Can
    # lose precision if |mean| >> std -- switch to a shifted/two-pass accumulation then.
    var = jnp.maximum(s2 * inv_n - mean * mean, 0.0)
    scale = gamma * jax.lax.rsqrt(var + BN_EPS)
    shift = beta - mean * scale

    # ---------------- call 2: normalize + relu + Linear-2 ----------------
    apply_grid = pltpu.PrefetchScalarGridSpec(
        num_scalar_prefetch=1,
        grid=(n_tiles,),
        in_specs=[
            pl.BlockSpec((tile_n, d_in), lambda i, hd: (i, 0)),   # x tile
            head_block((d_in, hidden)),                           # W1
            pl.BlockSpec((1, hidden), lambda i, hd: (0, 0)),      # scale
            pl.BlockSpec((1, hidden), lambda i, hd: (0, 0)),      # shift
            head_block((hidden, d_out_pad)),                      # W2
            head_block((1, d_out_pad)),                           # b2
        ],
        out_specs=pl.BlockSpec((tile_n, d_out_pad), lambda i, hd: (i, 0)),
    )
    out = pl.pallas_call(
        _apply_kernel,
        out_shape=jax.ShapeDtypeStruct((n_pad, d_out_pad), out_dtype),
        grid_spec=apply_grid,
        compiler_params=pltpu.CompilerParams(
            # No cross-tile dependency in the apply pass -> megacore-parallel on v7x.
            dimension_semantics=("parallel",),
            vmem_limit_bytes=vmem_budget,
        ),
        cost_estimate=pl.CostEstimate(
            flops=2 * n_pad * d_in * hidden + 2 * n_pad * hidden * d_out_pad,
            transcendentals=0,
            bytes_accessed=(n_pad * d_in * 4 + d_in * hidden * 2 + hidden * d_out_pad * 2
                            + 2 * hidden * 4 + d_out_pad * 4
                            + n_pad * d_out_pad * out_bytes),
        ),
    )(head, x_p, w1, scale, shift, w2, b2)

    return out[:n, :d_out]


def init_params(key, num_heads, input_dims, hidden_dims, output_dims):
    """Deterministic synthetic parameters (shapes match the PyTorch module)."""
    ks = jax.random.split(key, 6)
    scale1 = 1.0 / jnp.sqrt(input_dims)
    scale2 = 1.0 / jnp.sqrt(hidden_dims)
    return {
        "w1": jax.random.uniform(ks[0], (num_heads, input_dims, hidden_dims),
                                 jnp.float32, -scale1, scale1),
        # b1 is kept for module fidelity but is mathematically absorbed by BatchNorm
        # (bias before BN is cancelled by the mean subtraction), so the kernels skip it.
        "b1": jax.random.uniform(ks[1], (num_heads, 1, hidden_dims),
                                 jnp.float32, -scale1, scale1),
        "gamma": jnp.ones((num_heads, 1, hidden_dims), jnp.float32),
        "beta": jnp.zeros((num_heads, 1, hidden_dims), jnp.float32),
        "w2": jax.random.uniform(ks[2], (num_heads, hidden_dims, output_dims),
                                 jnp.float32, -scale2, scale2),
        "b2": jax.random.uniform(ks[3], (num_heads, 1, output_dims),
                                 jnp.float32, -scale2, scale2),
    }


def _reference_forward_f32(x, params, head_index):
    """Pure-JAX f32 reference matching the PyTorch module (training-mode BN, eval dropout)."""
    w1, b1 = params["w1"][head_index], params["b1"][head_index]
    gamma, beta = params["gamma"][head_index], params["beta"][head_index]
    w2, b2 = params["w2"][head_index], params["b2"][head_index]
    h = x @ w1 + b1
    mean = h.mean(axis=0, keepdims=True)
    var = ((h - mean) ** 2).mean(axis=0, keepdims=True)
    hn = (h - mean) / jnp.sqrt(var + BN_EPS) * gamma + beta
    r = jnp.maximum(hn, 0.0)
    return r @ w2 + b2


def _reference_forward_mixed(x, params, head_index):
    """Same math with the kernel's bf16 MXU-operand casts (tight-tolerance check)."""
    w1 = params["w1"][head_index].astype(jnp.bfloat16)
    b1 = params["b1"][head_index]
    gamma, beta = params["gamma"][head_index], params["beta"][head_index]
    w2 = params["w2"][head_index].astype(jnp.bfloat16)
    b2 = params["b2"][head_index]
    h = jnp.dot(x.astype(jnp.bfloat16), w1, preferred_element_type=jnp.float32) + b1
    mean = h.mean(axis=0, keepdims=True)
    var = ((h - mean) ** 2).mean(axis=0, keepdims=True)
    hn = (h - mean) / jnp.sqrt(var + BN_EPS) * gamma + beta
    r = jnp.maximum(hn, 0.0)
    return jnp.dot(r.astype(jnp.bfloat16), w2, preferred_element_type=jnp.float32) + b2


if __name__ == "__main__":
    num_heads = 5
    input_dims = 32
    hidden_dims = 256
    output_dims = 128
    batch = 8
    head_index = 2

    key = jax.random.PRNGKey(0)
    k_x, k_p = jax.random.split(key)
    x = jax.random.normal(k_x, (batch, input_dims), jnp.float32)
    params = init_params(k_p, num_heads, input_dims, hidden_dims, output_dims)

    out = mutil_projection_heads_forward(x, params, jnp.int32(head_index))
    out = jax.block_until_ready(out)
    assert out.shape == (batch, output_dims)
    assert out.dtype == jnp.float32

    # Tight check against a matching mixed-precision reference.
    ref_mixed = _reference_forward_mixed(x, params, head_index)
    assert jnp.allclose(out, ref_mixed, atol=3e-3, rtol=3e-3)

    # Loose sanity check against the full-f32 PyTorch-semantics reference
    # (slack accounts for the bf16 MXU operands).
    ref_f32 = _reference_forward_f32(x, params, head_index)
    assert jnp.allclose(out, ref_f32, atol=1e-1, rtol=1e-1)

    print("KERNEL_OK")
</pallas_src>

<mosaic_0001>
module attributes {stable_mosaic.version = 11 : i64} {
  func.func @_stats_kernel(%arg0: i32, %arg1: memref<1xi32, #tpu.memory_space<smem>>, %arg2: memref<8x32xf32, #tpu.memory_space<vmem>>, %arg3: memref<1x32x256xbf16, #tpu.memory_space<vmem>>, %arg4: memref<1x256xf32, #tpu.memory_space<vmem>>, %arg5: memref<1x256xf32, #tpu.memory_space<vmem>>) attributes {dimension_semantics = [#tpu.dimension_semantics<arbitrary>], iteration_bounds = array<i64: 1>, scalar_prefetch = 1 : i64, scratch_operands = 0 : i64, tpu.core_type = #tpu.core_type<tc>, window_params = [{transform_indices = @transform_0, window_bounds = array<i64: 8, 32>}, {transform_indices = @transform_1, window_bounds = array<i64: 1, 32, 256>}, {pipeline_mode = #tpu.pipeline_mode<synchronous>, transform_indices = @transform_2, window_bounds = array<i64: 1, 256>}, {pipeline_mode = #tpu.pipeline_mode<synchronous>, transform_indices = @transform_3, window_bounds = array<i64: 1, 256>}]} {
    %c0 = arith.constant 0 : index
    %c0_0 = arith.constant 0 : index
    %0 = vector.load %arg2[%c0, %c0_0] : memref<8x32xf32, #tpu.memory_space<vmem>>, vector<8x32xf32>
    %1 = arith.truncf %0 : vector<8x32xf32> to vector<8x32xbf16>
    %c0_1 = arith.constant 0 : index
    %c0_2 = arith.constant 0 : index
    %c0_3 = arith.constant 0 : index
    %2 = vector.load %arg3[%c0_1, %c0_2, %c0_3] : memref<1x32x256xbf16, #tpu.memory_space<vmem>>, vector<1x32x256xbf16>
    %3 = vector.shape_cast %2 : vector<1x32x256xbf16> to vector<32x256xbf16>
    %cst = arith.constant dense<0.000000e+00> : vector<8x256xf32>
    %4 = tpu.matmul %1, %3, %cst {dimension_numbers = #tpu.dot_dimension_numbers<[1], [0], [0], [1], [0, 0, 1, 1], [], []>} : vector<8x32xbf16>, vector<32x256xbf16>, vector<8x256xf32> -> vector<8x256xf32>
    %c0_i32 = arith.constant 0 : i32
    %5 = arith.cmpi eq, %arg0, %c0_i32 : i32
    %6 = arith.extui %5 : i1 to i32
    %c0_i32_4 = arith.constant 0 : i32
    %7 = arith.cmpi ne, %6, %c0_i32_4 : i32
    scf.if %7 {
      %cst_15 = arith.constant 0.000000e+00 : f32
      %19 = vector.broadcast %cst_15 : f32 to vector<1x256xf32>
      %c0_16 = arith.constant 0 : index
      %c0_17 = arith.constant 0 : index
      %20 = vector.load %arg4[%c0_16, %c0_17] : memref<1x256xf32, #tpu.memory_space<vmem>>, vector<1x256xf32>
      tpu.vector_store %arg4[%c0_16, %c0_17], %19 {strides = array<i32>} : memref<1x256xf32, #tpu.memory_space<vmem>>, vector<1x256xf32>,
      %cst_18 = arith.constant 0.000000e+00 : f32
      %21 = vector.broadcast %cst_18 : f32 to vector<1x256xf32>
      %c0_19 = arith.constant 0 : index
      %c0_20 = arith.constant 0 : index
      %22 = vector.load %arg5[%c0_19, %c0_20] : memref<1x256xf32, #tpu.memory_space<vmem>>, vector<1x256xf32>
      tpu.vector_store %arg5[%c0_19, %c0_20], %21 {strides = array<i32>} : memref<1x256xf32, #tpu.memory_space<vmem>>, vector<1x256xf32>,
    } else {
    }
    %c0_5 = arith.constant 0 : index
    %c0_6 = arith.constant 0 : index
    %8 = vector.load %arg4[%c0_5, %c0_6] : memref<1x256xf32, #tpu.memory_space<vmem>>, vector<1x256xf32>
    %cst_7 = arith.constant dense<0.000000e+00> : vector<256xf32>
    %9 = vector.multi_reduction <add>, %4, %cst_7 [0] : vector<8x256xf32> to vector<256xf32>
    %10 = vector.shape_cast %9 : vector<256xf32> to vector<1x256xf32>
    %11 = arith.addf %8, %10 : vector<1x256xf32>
    %c0_8 = arith.constant 0 : index
    %c0_9 = arith.constant 0 : index
    %12 = vector.load %arg4[%c0_8, %c0_9] : memref<1x256xf32, #tpu.memory_space<vmem>>, vector<1x256xf32>
    tpu.vector_store %arg4[%c0_8, %c0_9], %11 {strides = array<i32>} : memref<1x256xf32, #tpu.memory_space<vmem>>, vector<1x256xf32>,
    %c0_10 = arith.constant 0 : index
    %c0_11 = arith.constant 0 : index
    %13 = vector.load %arg5[%c0_10, %c0_11] : memref<1x256xf32, #tpu.memory_space<vmem>>, vector<1x256xf32>
    %14 = arith.mulf %4, %4 : vector<8x256xf32>
    %cst_12 = arith.constant dense<0.000000e+00> : vector<256xf32>
    %15 = vector.multi_reduction <add>, %14, %cst_12 [0] : vector<8x256xf32> to vector<256xf32>
    %16 = vector.shape_cast %15 : vector<256xf32> to vector<1x256xf32>
    %17 = arith.addf %13, %16 : vector<1x256xf32>
    %c0_13 = arith.constant 0 : index
    %c0_14 = arith.constant 0 : index
    %18 = vector.load %arg5[%c0_13, %c0_14] : memref<1x256xf32, #tpu.memory_space<vmem>>, vector<1x256xf32>
    tpu.vector_store %arg5[%c0_13, %c0_14], %17 {strides = array<i32>} : memref<1x256xf32, #tpu.memory_space<vmem>>, vector<1x256xf32>,
    return
  }
  func.func @transform_0(%arg0: i32, %arg1: memref<1xi32, #tpu.memory_space<smem>>) -> (i32, i32) {
    %c0_i32 = arith.constant 0 : i32
    %c0_i32_0 = arith.constant 0 : i32
    return %arg0, %c0_i32 : i32, i32
  }
  func.func @transform_1(%arg0: i32, %arg1: memref<1xi32, #tpu.memory_space<smem>>) -> (i32, i32, i32) {
    %c0 = arith.constant 0 : index
    %0 = memref.load %arg1[%c0] : memref<1xi32, #tpu.memory_space<smem>>
    %c0_i32 = arith.constant 0 : i32
    %c0_i32_0 = arith.constant 0 : i32
    %c0_i32_1 = arith.constant 0 : i32
    return %0, %c0_i32, %c0_i32_0 : i32, i32, i32
  }
  func.func @transform_2(%arg0: i32, %arg1: memref<1xi32, #tpu.memory_space<smem>>) -> (i32, i32) {
    %c0_i32 = arith.constant 0 : i32
    %c0_i32_0 = arith.constant 0 : i32
    %c0_i32_1 = arith.constant 0 : i32
    return %c0_i32, %c0_i32_0 : i32, i32
  }
  func.func @transform_3(%arg0: i32, %arg1: memref<1xi32, #tpu.memory_space<smem>>) -> (i32, i32) {
    %c0_i32 = arith.constant 0 : i32
    %c0_i32_0 = arith.constant 0 : i32
    %c0_i32_1 = arith.constant 0 : i32
    return %c0_i32, %c0_i32_0 : i32, i32
  }
}

module attributes {stable_mosaic.version = 11 : i64} {
  func.func @_apply_kernel(%arg0: i32, %arg1: memref<1xi32, #tpu.memory_space<smem>>, %arg2: memref<8x32xf32, #tpu.memory_space<vmem>>, %arg3: memref<1x32x256xbf16, #tpu.memory_space<vmem>>, %arg4: memref<1x256xf32, #tpu.memory_space<vmem>>, %arg5: memref<1x256xf32, #tpu.memory_space<vmem>>, %arg6: memref<1x256x128xbf16, #tpu.memory_space<vmem>>, %arg7: memref<1x1x128xf32, #tpu.memory_space<vmem>>, %arg8: memref<8x128xf32, #tpu.memory_space<vmem>>) attributes {dimension_semantics = [#tpu.dimension_semantics<parallel>], iteration_bounds = array<i64: 1>, scalar_prefetch = 1 : i64, scratch_operands = 0 : i64, tpu.core_type = #tpu.core_type<tc>, window_params = [{transform_indices = @transform_0, window_bounds = array<i64: 8, 32>}, {transform_indices = @transform_1, window_bounds = array<i64: 1, 32, 256>}, {pipeline_mode = #tpu.pipeline_mode<synchronous>, transform_indices = @transform_2, window_bounds = array<i64: 1, 256>}, {pipeline_mode = #tpu.pipeline_mode<synchronous>, transform_indices = @transform_3, window_bounds = array<i64: 1, 256>}, {transform_indices = @transform_4, window_bounds = array<i64: 1, 256, 128>}, {transform_indices = @transform_5, window_bounds = array<i64: 1, 1, 128>}, {transform_indices = @transform_6, window_bounds = array<i64: 8, 128>}]} {
    %c0 = arith.constant 0 : index
    %c0_0 = arith.constant 0 : index
    %0 = vector.load %arg2[%c0, %c0_0] : memref<8x32xf32, #tpu.memory_space<vmem>>, vector<8x32xf32>
    %1 = arith.truncf %0 : vector<8x32xf32> to vector<8x32xbf16>
    %c0_1 = arith.constant 0 : index
    %c0_2 = arith.constant 0 : index
    %c0_3 = arith.constant 0 : index
    %2 = vector.load %arg3[%c0_1, %c0_2, %c0_3] : memref<1x32x256xbf16, #tpu.memory_space<vmem>>, vector<1x32x256xbf16>
    %3 = vector.shape_cast %2 : vector<1x32x256xbf16> to vector<32x256xbf16>
    %cst = arith.constant dense<0.000000e+00> : vector<8x256xf32>
    %4 = tpu.matmul %1, %3, %cst {dimension_numbers = #tpu.dot_dimension_numbers<[1], [0], [0], [1], [0, 0, 1, 1], [], []>} : vector<8x32xbf16>, vector<32x256xbf16>, vector<8x256xf32> -> vector<8x256xf32>
    %c0_4 = arith.constant 0 : index
    %c0_5 = arith.constant 0 : index
    %5 = vector.load %arg4[%c0_4, %c0_5] : memref<1x256xf32, #tpu.memory_space<vmem>>, vector<1x256xf32>
    %6 = vector.broadcast %5 : vector<1x256xf32> to vector<8x256xf32>
    %7 = arith.mulf %4, %6 : vector<8x256xf32>
    %c0_6 = arith.constant 0 : index
    %c0_7 = arith.constant 0 : index
    %8 = vector.load %arg5[%c0_6, %c0_7] : memref<1x256xf32, #tpu.memory_space<vmem>>, vector<1x256xf32>
    %9 = vector.broadcast %8 : vector<1x256xf32> to vector<8x256xf32>
    %10 = arith.addf %7, %9 : vector<8x256xf32>
    %cst_8 = arith.constant 0.000000e+00 : f32
    %11 = vector.broadcast %cst_8 : f32 to vector<8x256xf32>
    %12 = arith.maximumf %10, %11 : vector<8x256xf32>
    %13 = arith.truncf %12 : vector<8x256xf32> to vector<8x256xbf16>
    %c0_9 = arith.constant 0 : index
    %c0_10 = arith.constant 0 : index
    %c0_11 = arith.constant 0 : index
    %14 = vector.load %arg6[%c0_9, %c0_10, %c0_11] : memref<1x256x128xbf16, #tpu.memory_space<vmem>>, vector<1x256x128xbf16>
    %15 = vector.shape_cast %14 : vector<1x256x128xbf16> to vector<256x128xbf16>
    %cst_12 = arith.constant dense<0.000000e+00> : vector<8x128xf32>
    %16 = tpu.matmul %13, %15, %cst_12 {dimension_numbers = #tpu.dot_dimension_numbers<[1], [0], [0], [1], [0, 0, 1, 1], [], []>} : vector<8x256xbf16>, vector<256x128xbf16>, vector<8x128xf32> -> vector<8x128xf32>
    %c0_13 = arith.constant 0 : index
    %c0_14 = arith.constant 0 : index
    %c0_15 = arith.constant 0 : index
    %17 = vector.load %arg7[%c0_13, %c0_14, %c0_15] : memref<1x1x128xf32, #tpu.memory_space<vmem>>, vector<1x1x128xf32>
    %18 = vector.shape_cast %17 : vector<1x1x128xf32> to vector<1x128xf32>
    %19 = vector.broadcast %18 : vector<1x128xf32> to vector<8x128xf32>
    %20 = arith.addf %16, %19 : vector<8x128xf32>
    %c0_16 = arith.constant 0 : index
    %c0_17 = arith.constant 0 : index
    %21 = vector.load %arg8[%c0_16, %c0_17] : memref<8x128xf32, #tpu.memory_space<vmem>>, vector<8x128xf32>
    tpu.vector_store %arg8[%c0_16, %c0_17], %20 {strides = array<i32>} : memref<8x128xf32, #tpu.memory_space<vmem>>, vector<8x128xf32>,
    return
  }
  func.func @transform_0(%arg0: i32, %arg1: memref<1xi32, #tpu.memory_space<smem>>) -> (i32, i32) {
    %c0_i32 = arith.constant 0 : i32
    %c0_i32_0 = arith.constant 0 : i32
    return %arg0, %c0_i32 : i32, i32
  }
  func.func @transform_1(%arg0: i32, %arg1: memref<1xi32, #tpu.memory_space<smem>>) -> (i32, i32, i32) {
    %c0 = arith.constant 0 : index
    %0 = memref.load %arg1[%c0] : memref<1xi32, #tpu.memory_space<smem>>
    %c0_i32 = arith.constant 0 : i32
    %c0_i32_0 = arith.constant 0 : i32
    %c0_i32_1 = arith.constant 0 : i32
    return %0, %c0_i32, %c0_i32_0 : i32, i32, i32
  }
  func.func @transform_2(%arg0: i32, %arg1: memref<1xi32, #tpu.memory_space<smem>>) -> (i32, i32) {
    %c0_i32 = arith.constant 0 : i32
    %c0_i32_0 = arith.constant 0 : i32
    %c0_i32_1 = arith.constant 0 : i32
    return %c0_i32, %c0_i32_0 : i32, i32
  }
  func.func @transform_3(%arg0: i32, %arg1: memref<1xi32, #tpu.memory_space<smem>>) -> (i32, i32) {
    %c0_i32 = arith.constant 0 : i32
    %c0_i32_0 = arith.constant 0 : i32
    %c0_i32_1 = arith.constant 0 : i32
    return %c0_i32, %c0_i32_0 : i32, i32
  }
  func.func @transform_4(%arg0: i32, %arg1: memref<1xi32, #tpu.memory_space<smem>>) -> (i32, i32, i32) {
    %c0 = arith.constant 0 : index
    %0 = memref.load %arg1[%c0] : memref<1xi32, #tpu.memory_space<smem>>
    %c0_i32 = arith.constant 0 : i32
    %c0_i32_0 = arith.constant 0 : i32
    %c0_i32_1 = arith.constant 0 : i32
    return %0, %c0_i32, %c0_i32_0 : i32, i32, i32
  }
  func.func @transform_5(%arg0: i32, %arg1: memref<1xi32, #tpu.memory_space<smem>>) -> (i32, i32, i32) {
    %c0 = arith.constant 0 : index
    %0 = memref.load %arg1[%c0] : memref<1xi32, #tpu.memory_space<smem>>
    %c0_i32 = arith.constant 0 : i32
    %c0_i32_0 = arith.constant 0 : i32
    %c0_i32_1 = arith.constant 0 : i32
    return %0, %c0_i32, %c0_i32_0 : i32, i32, i32
  }
  func.func @transform_6(%arg0: i32, %arg1: memref<1xi32, #tpu.memory_space<smem>>) -> (i32, i32) {
    %c0_i32 = arith.constant 0 : i32
    %c0_i32_0 = arith.constant 0 : i32
    return %arg0, %c0_i32 : i32, i32
  }
}

</mosaic_0001>

<bundles_post_ra>
// kernel: mutil_projection_heads_forward.2
= control target key start
LH: loop header
LB: loop body
LE: loop exit
PB: predicated region body
PF: predicated region fallthrough
CT: control target
= control target key end

     0   :  { %v220_v0 = vmov 0   ;;  %vm62_vm0 = vcmask 261120   ;;  %v111_v7 = vlaneseq  ;;  %v221_v9 = vmov 0.0   ;;  %s290_s0 = inlined_call_operand.<no memory space> [shape: s32[1], index: 0, kind: input, shape index: {}]   ;;  %s291_s2 = inlined_call_operand.vmem [shape: bf16[5,32,256], index: 2, kind: input, shape index: {}]   ;;  %s292_s1 = inlined_call_operand.vmem [shape: f32[8,32], index: 1, kind: input, shape index: {}]   ;;  %s293_s3 = inlined_call_operand.vmem [shape: f32[1,256], index: 3, kind: output, shape index: {0}]   ;;  %s294_s4 = inlined_call_operand.vmem [shape: f32[1,256], index: 4, kind: output, shape index: {1}]  }
   0x1   :  { %p29_p0 = scmp.lt.s32.totalorder %s290_s0, 4  ;;  %98 = vmatprep.mubr.bf16.mxu0 %v220_v0  ;;  %v36_v5 = vld [vmem:[%s292_s1] sm:$0xff]  ;;  %v222_v21 = vmov 1966171168  }
   0x2   :  { %v37_v6 = vpack.c.bf16 %v36_v5, %v36_v5  ;;  %vm260_vm1 = vcmp.lt.s32.totalorder %v111_v7, 256  ;;  %v134_v22 = vunpack.c.l.s4 %v222_v21  ;;  %v137_v32 = vshrl.u32 %v111_v7, 7 }
   0x3   :  { %s298_s0 = smov (!%p29_p0, %s290_s0), 4  ;;  %115 = vst.msk [vmem:[%s293_s3] sm:$0x3] %vm260_vm1, %v221_v9  ;;  %116 = vst.msk [vmem:[%s294_s4] sm:$0x3] %vm260_vm1, %v221_v9 }
   0x4   :  { %s210_s19 = sshll.u32 %s298_s0, 5  ;;  %v135_v31 = vunpack.c.0.s8 %v134_v22 }
   0x5   :  { %s33_s22 = scalar_lea.vmem %s291_s2, %s210_s19 }
   0x6   :  { %v214_v1 = vld [vmem:[%s33_s22 + $0x4] ss:$8 sps:$4 sm:$0xff]   ;;  %v216_v2 = vld [vmem:[%s33_s22] ss:$8 sps:$4 sm:$0xff]   ;;  %v217_v3 = vld [vmem:[%s33_s22 + $0x14] ss:$8 sps:$4 sm:$0xff]   ;;  %v138_v41 = vsub.s32 %v135_v31, %v137_v32 }
   0x7   :  { %66 = vmatprep.subr.bf16.mxu0 %v214_v1  ;;  %v219_v4 = vld [vmem:[%s33_s22 + $0x10] ss:$8 sps:$4 sm:$0xff]  }
   0x8   :  { %67 = vmatpush1.bf16.msra.mxu0 %v216_v2 }
   0x9   :  { %68 = vmatprep.subr.bf16.mxu0 %v217_v3 }
   0xa   :  { %v117_v48 = vld [vmem:[%s293_s3] sm:$0x3] }
   0xb   :  { %v154_v51 = vld [vmem:[%s294_s4] sm:$0x3] }
   0xc   :  { %69 = vmatpush1.bf16.msra.mxu0 %v219_v4 }
   0xf   :  { %209 = vmatmul.mubr.msk.bf16.vlgmr.msra.gmra.mrb[0].mxu0 %vm62_vm0, %v37_v6 }
  0xe2   :  { %v100_v10 = vpop.f32.mrb[0].mxu0 }
  0xe3   :  { %v118_v11 = vrot.slane %v100_v10, 4  ;;  %v155_v12 = vmul.f32 %v100_v10, %v100_v10  ;;  %v102_v13 = vpop.f32.mrb[1].mxu0 }
  0xe4   :  { %v124_v14 = vrot.slane %v102_v13, 4  ;;  %v156_v15 = vmul.f32 %v102_v13, %v102_v13  ;;  %v104_v16 = vpop.f32.mrb[2].mxu0 }
  0xe5   :  { %v119_v17 = vadd.f32 %v118_v11, %v100_v10  ;;  %v157_v18 = vrot.slane %v155_v12, 4  ;;  %v105_v19 = vpop.f32.mrb[3].mxu0 }
  0xe6   :  { %v125_v20 = vadd.f32 %v124_v14, %v102_v13  ;;  %v163_v23 = vrot.slane %v156_v15, 4 }
  0xe7   :  { %v120_v24 = vrot.slane %v119_v17, 2  ;;  %v158_v25 = vadd.f32 %v157_v18, %v155_v12 }
  0xe8   :  { %v126_v26 = vrot.slane %v125_v20, 2  ;;  %v164_v27 = vadd.f32 %v163_v23, %v156_v15 }
  0xe9   :  { %v121_v28 = vadd.f32 %v120_v24, %v119_v17  ;;  %v159_v29 = vrot.slane %v158_v25, 2 }
  0xea   :  { %v127_v30 = vadd.f32 %v126_v26, %v125_v20  ;;  %v165_v33 = vrot.slane %v164_v27, 2 }
  0xeb   :  { %v122_v34 = vrot.slane %v121_v28, 1  ;;  %v160_v35 = vadd.f32 %v159_v29, %v158_v25 }
  0xec   :  { %v128_v36 = vrot.slane %v127_v30, 1  ;;  %v166_v37 = vadd.f32 %v165_v33, %v164_v27 }
  0xed   :  { %v123_v38 = vadd.f32 %v122_v34, %v121_v28  ;;  %v161_v39 = vrot.slane %v160_v35, 1 }
  0xee   :  { %v129_v40 = vadd.f32 %v128_v36, %v127_v30  ;;  %v167_v42 = vrot.slane %v166_v37, 1 }
  0xef   :  { %v162_v43 = vadd.f32 %v161_v39, %v160_v35 }
  0xf0   :  { %v132_v44 = vcombine.low %v123_v38, %v129_v40  ;;  %v168_v45 = vadd.f32 %v167_v42, %v166_v37 }
  0xf2   :  { %v139_v46 = vrot.slane %v132_v44, %v138_v41  ;;  %v171_v47 = vcombine.low %v162_v43, %v168_v45 }
  0xf4   :  { %v146_v49 = vrot.slane %v139_v46, %v138_v41  ;;  %v178_v50 = vrot.slane %v171_v47, %v138_v41 }
  0xf6   :  { %v148_v52 = vadd.f32 %v146_v49, %v117_v48  ;;  %v185_v53 = vrot.slane %v178_v50, %v138_v41 }
  0xf8   :  { %153 = vst.msk [vmem:[%s293_s3] sm:$0x3] %vm260_vm1, %v148_v52  ;;  %v187_v54 = vadd.f32 %v185_v53, %v154_v51 }
  0xfa   :  { %188 = vst.msk [vmem:[%s294_s4] sm:$0x3] %vm260_vm1, %v187_v54 }

// kernel: mutil_projection_heads_forward.3
= control target key start
LH: loop header
LB: loop body
LE: loop exit
PB: predicated region body
PF: predicated region fallthrough
CT: control target
= control target key end

     0   :  { %s588_s0 = inlined_call_operand.<no memory space> [shape: s32[1], index: 0, kind: input, shape index: {}]   ;;  %s589_s1 = inlined_call_operand.vmem [shape: f32[8,32], index: 1, kind: input, shape index: {}]   ;;  %s590_s2 = inlined_call_operand.vmem [shape: bf16[5,32,256], index: 2, kind: input, shape index: {}]   ;;  %s591_s3 = inlined_call_operand.vmem [shape: f32[1,256], index: 3, kind: input, shape index: {}]   ;;  %s592_s4 = inlined_call_operand.vmem [shape: f32[1,256], index: 4, kind: input, shape index: {}]   ;;  %s593_s5 = inlined_call_operand.vmem [shape: bf16[5,256,128], index: 5, kind: input, shape index: {}]   ;;  %s594_s6 = inlined_call_operand.vmem [shape: f32[5,1,128], index: 6, kind: input, shape index: {}]   ;;  %s595_s7 = inlined_call_operand.hbm [shape: f32[8,128], index: 7, kind: output, shape index: {}]  }
   0x1   :  { %p62_p0 = scmp.lt.s32.totalorder %s588_s0, 4 }
   0x2   :  { %13 = vsyncpa [#allocation5], 0  ;;  %v487_v0 = vmov 0   ;;  %v81_v3 = vld [vmem:[%s589_s1] sm:$0xff]  ;;  %vm107_vm0 = vcmask 261120   ;;  %v154_v23 = vlaneseq  ;;  %s488_s17 = smov [#allocation4]  }
   0x3   :  { %143 = vmatprep.mubr.bf16.mxu0 %v487_v0  ;;  %s597_s0 = smov (!%p62_p0, %s588_s0), 4  ;;  %v82_v9 = vpack.c.bf16 %v81_v3, %v81_v3  ;;  %v152_v26 = vld [vmem:[%s591_s3] sm:$0x3]  ;;  %s366_s18 = sshll.u32 %s488_s17, 4  ;;  %s367_s18 = int_to_ptr.vmem [resolvable:$true] %s366_s18 }
   0x4   :  { %s415_s28 = sshll.u32 %s597_s0, 5  ;;  %s416_s29 = sshll.u32 %s597_s0, 7  ;;  %v155_v24 = vshrl.u32 %v154_v23, 7  ;;  %v166_v28 = vld [vmem:[%s592_s4] sm:$0x3] }
   0x5   :  { %s66_s9 = scalar_lea.vmem %s590_s2, %s415_s28  ;;  %s545_s12 = scalar_lea.vmem %s593_s5, %s416_s29 }
   0x6   :  { %v441_v1 = vld [vmem:[%s66_s9 + $0x4] ss:$8 sps:$4 sm:$0xff]   ;;  %v443_v2 = vld [vmem:[%s66_s9] ss:$8 sps:$4 sm:$0xff]   ;;  %v444_v4 = vld [vmem:[%s66_s9 + $0x14] ss:$8 sps:$4 sm:$0xff]   ;;  %s78_s16 = scalar_lea.vmem %s594_s6, %s597_s0  ;;  %p468_p2 = scmp.lt.s32.totalorder %s367_s18, %s367_s18 }
   0x7   :  { %111 = vmatprep.subr.bf16.mxu0 %v441_v1  ;;  %v446_v5 = vld [vmem:[%s66_s9 + $0x10] ss:$8 sps:$4 sm:$0xff]   ;;  %v447_v6 = vld [vmem:[%s545_s12 + $0x40] sm:$0xff]   ;;  %v449_v8 = vld [vmem:[%s545_s12 + $0x48] sm:$0xff]   ;;  %v156_v25 = vsub.s32 0, %v155_v24  ;;  %v160_v27 = vsub.s32 1, %v155_v24 }
   0x8   :  { %112 = vmatpush1.bf16.msra.mxu0 %v443_v2  ;;  %v448_v7 = vld [vmem:[%s545_s12] sm:$0xff]   ;;  %417 = vmatprep.subr.bf16.mxu1 %v447_v6  ;;  %v450_v10 = vld [vmem:[%s545_s12 + $0x8] sm:$0xff]   ;;  %v451_v11 = vld [vmem:[%s545_s12 + $0x50] sm:$0xff]   ;;  %s463_s19 = scalar_lea.vmem %s367_s18, 128 }
   0x9   :  { %113 = vmatprep.subr.bf16.mxu0 %v444_v4  ;;  %418 = vmatpush3.bf16.msra.mxu1 %v448_v7  ;;  %v452_v12 = vld [vmem:[%s545_s12 + $0x10] sm:$0xff]   ;;  %v453_v13 = vld [vmem:[%s545_s12 + $0x58] sm:$0xff]   ;;  %v455_v15 = vld [vmem:[%s545_s12 + $0x60] sm:$0xff]   ;;  %v157_v29 = vrot.slane %v152_v26, %v156_v25  ;;  %v161_v30 = vrot.slane %v152_v26, %v160_v27  ;;  %v171_v31 = vrot.slane %v166_v28, %v156_v25  ;;  %p464_p1 = scmp.ne.s32.totalorder %s367_s18, %s463_s19  ;;  %p469_p3 = scmp.lt.s32.totalorder %s463_s19, %s463_s19 }
   0xa   :  { %419 = vmatprep.subr.bf16.mxu1 %v449_v8  ;;  %v454_v14 = vld [vmem:[%s545_s12 + $0x18] sm:$0xff]   ;;  %v456_v16 = vld [vmem:[%s545_s12 + $0x20] sm:$0xff]   ;;  %v457_v17 = vld [vmem:[%s545_s12 + $0x68] sm:$0xff]   ;;  %v175_v33 = vrot.slane %v166_v28, %v160_v27 }
   0xb   :  { %v458_v18 = vld [vmem:[%s545_s12 + $0x28] sm:$0xff]   ;;  %v459_v19 = vld [vmem:[%s545_s12 + $0x70] sm:$0xff]   ;;  %v461_v21 = vld [vmem:[%s545_s12 + $0x78] sm:$0xff]   ;;  %p470_p4 = por %p469_p3, %p468_p2 }
   0xc   :  { %114 = vmatpush1.bf16.msra.mxu0 %v446_v5  ;;  %v460_v20 = vld [vmem:[%s545_s12 + $0x30] sm:$0xff]   ;;  %v462_v22 = vld [vmem:[%s545_s12 + $0x38] sm:$0xff]   ;;  %v398_v47 = vld [vmem:[%s78_s16] ss:$0 sm:$0xff] }
   0xd   :  { %420 = vmatpush3.bf16.msra.mxu1 %v450_v10  ;;  %p471_p5 = pnand %p470_p4, %p464_p1 }
   0xe   :  { %421 = vmatprep.subr.bf16.mxu1 %v451_v11 }
   0xf   :  { %397 = vmatmul.mubr.msk.bf16.vlgmr.msra.gmra.mrb[0].mxu0 %vm107_vm0, %v82_v9 }
  0x11   :  { %422 = vmatpush3.bf16.msra.mxu1 %v452_v12 }
  0x12   :  { %423 = vmatprep.subr.bf16.mxu1 %v453_v13 }
  0x15   :  { %424 = vmatpush3.bf16.msra.mxu1 %v454_v14 }
  0x16   :  { %425 = vmatprep.subr.bf16.mxu1 %v455_v15 }
  0x19   :  { %426 = vmatpush3.bf16.msra.mxu1 %v456_v16 }
  0x1a   :  { %427 = vmatprep.subr.bf16.mxu1 %v457_v17 }
  0x1d   :  { %428 = vmatpush3.bf16.msra.mxu1 %v458_v18 }
  0x1e   :  { %429 = vmatprep.subr.bf16.mxu1 %v459_v19 }
  0x21   :  { %430 = vmatpush3.bf16.msra.mxu1 %v460_v20 }
  0x22   :  { %431 = vmatprep.subr.bf16.mxu1 %v461_v21 }
  0x25   :  { %432 = vmatpush3.bf16.msra.mxu1 %v462_v22 }
  0xe2   :  { %v145_v32 = vpop.f32.mrb[0].mxu0 }
  0xe3   :  { %v164_v34 = vmul.f32 %v157_v29, %v145_v32  ;;  %v147_v35 = vpop.f32.mrb[1].mxu0 }
  0xe4   :  { %v165_v36 = vmul.f32 %v161_v30, %v147_v35  ;;  %v149_v37 = vpop.f32.mrb[2].mxu0 }
  0xe5   :  { %v178_v38 = vadd.f32 %v171_v31, %v164_v34  ;;  %v150_v39 = vpop.f32.mrb[3].mxu0 }
  0xe6   :  { %v179_v40 = vadd.f32 %v175_v33, %v165_v36 }
  0xe7   :  { %v180_v41 = vmax.f32 %v178_v38, 0.0 }
  0xe8   :  { %v181_v42 = vmax.f32 %v179_v40, 0.0 }
  0xe9   :  { %v182_v44 = vpack.c.bf16 %v180_v41, %v180_v41 }
  0xea   :  { %v183_v43 = vpack.c.bf16 %v181_v42, %v181_v42 }
  0xec   :  { %351 = vmatprep.mubr.bf16.mxu1 %v183_v43 }
  0xed   :  { %352 = vmatmul.mubr.bf16.vlgmr.msra.gmra.mrb[0].mxu1 %v182_v44 }
 0x1c0   :  { %v433_v45 = vpop.f32.mrb[0].mxu1 }
 0x1c1   :  { %v434_v46 = vpop.f32.mrb[1].mxu1 }
 0x1c2   :  { %v435_v48 = vadd.f32 %v434_v46, %v433_v45  ;;  %v436_v49 = vpop.f32.mrb[2].mxu1 }
 0x1c3   :  { %v437_v50 = vpop.f32.mrb[3].mxu1 }
 0x1c4   :  { %v354_v51 = vadd.f32 %v435_v48, %v398_v47 }
 0x1c6   :  { %359 = vst [vmem:[#allocation4] sm:$0xff] %v354_v51 }
 0x1c7   :  { %474 = shalt.err (!%p471_p5)
}
 0x1c8   :  { %s475_s6 = scalar_lea.hbm %s595_s7, 128 }
 0x1c9   :  { %p476_p6 = scmp.ne.s32.totalorder %s595_s7, %s475_s6  ;;  %p479_p7 = scmp.lt.u32.totalorder %s475_s6, %s595_s7 }
 0x1cb   :  { %p481_p8 = pnand %p479_p7, %p476_p6 }
 0x1cd   :  { %484 = shalt.err (!%p481_p8)
}
 0x1ce   :  { %369 = dma.vmem_to_hbm [thread:$0]  %s367_s18, 128, %s595_s7, [#allocation5]  }
 0x1cf   :  { %485 = dma.done.wait [#allocation5], 128  }
 0x1d0   :  { %486 = vsyncadd [#allocation5], 4294967168 }
 0x1d1   :  { %373 = vsyncpa [#allocation5], 1 }

</bundles_post_ra>
